<compile_context>
chip_gen: v7x
topology: tpu7x:2x2x1
jax: 0.10.0
libtpu: 0.0.40
codegen_flags: <defaults>
</compile_context>

<pallas_src>
import jax
import jax.numpy as jnp
from jax.experimental import pallas as pl
from jax.experimental.pallas import tpu as pltpu


def _cat_abc_tiled_kernel(a_ref, b_ref, o_ref):
    # a_ref, b_ref: (1, rt, L) in VMEM; o_ref: (1, 3, rt, L) in VMEM.
    a = a_ref[...]
    o_ref[:, 0, :, :] = a
    o_ref[:, 1, :, :] = b_ref[...]
    o_ref[:, 2, :, :] = a


def _cat_abc_flat_kernel(a_ref, b_ref, o_ref):
    # Fallback for lane-unaligned feature sizes: whole-array copy.
    chw = a_ref.shape[1]
    a = a_ref[...]
    o_ref[:, 0:chw] = a
    o_ref[:, chw:2 * chw] = b_ref[...]
    o_ref[:, 2 * chw:3 * chw] = a


def _pick_layout(chw, itemsize):
    """Pick (lane width L, rows R, row tile rt) giving (8,128)-dense blocks."""
    sub = {4: 8, 2: 16, 1: 32}.get(itemsize, 8)
    lane_candidates = (1024, 512, 256, 128)
    L = None
    # Prefer a lane width whose row count is sublane-aligned.
    for cand in lane_candidates:
        if chw % cand == 0 and (chw // cand) % sub == 0:
            L = cand
            break
    if L is None:
        for cand in lane_candidates:
            if chw % cand == 0:
                L = cand
                break
    if L is None:
        return None
    R = chw // L
    if R % sub == 0:
        rt = sub
        # Grow the row tile while it still divides R and the per-step input
        # block stays <= 512 KiB (=> <= ~5 MiB resident, double buffered).
        while R % (2 * rt) == 0 and (2 * rt) * L * itemsize <= (512 << 10):
            rt *= 2
    else:
        rt = R  # full-extent block along the sublane dim is always legal
    return L, R, rt


def cat_slice_cat(a, b):
    """Pallas equivalent of the module's forward: cat([a, b, a], dim=1)."""
    assert a.shape == b.shape and a.dtype == b.dtype
    N, C, H, W = a.shape
    chw = C * H * W
    itemsize = jnp.dtype(a.dtype).itemsize

    layout = _pick_layout(chw, itemsize)
    if layout is None:
        # TODO(synk): lane-unaligned C*H*W uses a single-block copy (correct
        # but unpipelined); pad/re-block if this path matters for perf.
        a2 = a.reshape(N, chw)
        b2 = b.reshape(N, chw)
        out2 = pl.pallas_call(
            _cat_abc_flat_kernel,
            out_shape=jax.ShapeDtypeStruct((N, 3 * chw), a.dtype),
            grid=(1,),
            in_specs=[
                pl.BlockSpec((N, chw), lambda i: (0, 0)),
                pl.BlockSpec((N, chw), lambda i: (0, 0)),
            ],
            out_specs=pl.BlockSpec((N, 3 * chw), lambda i: (0, 0)),
            compiler_params=pltpu.CompilerParams(
                dimension_semantics=("arbitrary",)),
        )(a2, b2)
        return out2.reshape(N, 3 * C, H, W)

    L, R, rt = layout
    a3 = a.reshape(N, R, L)
    b3 = b.reshape(N, R, L)

    out4 = pl.pallas_call(
        _cat_abc_tiled_kernel,
        out_shape=jax.ShapeDtypeStruct((N, 3, R, L), a.dtype),
        grid=(N, R // rt),
        in_specs=[
            pl.BlockSpec((1, rt, L), lambda n, r: (n, r, 0)),
            pl.BlockSpec((1, rt, L), lambda n, r: (n, r, 0)),
        ],
        out_specs=pl.BlockSpec((1, 3, rt, L), lambda n, r: (n, 0, r, 0)),
        compiler_params=pltpu.CompilerParams(
            dimension_semantics=("parallel", "parallel")),
    )(a3, b3)

    # (N, 3, R, L) has the same row-major layout as (N, 3*C*H*W):
    # segment 0 = a, segment 1 = b, segment 2 = a.
    return out4.reshape(N, 3 * C, H, W)


if __name__ == "__main__":
    key = jax.random.PRNGKey(0)
    ka, kb, kc, kd = jax.random.split(key, 4)

    # Small shape consistent with the module's (1, 1024, 4, 4) inputs.
    a = jax.random.normal(ka, (2, 256, 4, 4), dtype=jnp.float32)
    b = jax.random.normal(kb, (2, 256, 4, 4), dtype=jnp.float32)
    out = cat_slice_cat(a, b)
    jax.block_until_ready(out)
    ref = jnp.concatenate([a, b, a], axis=1)
    assert out.shape == ref.shape, (out.shape, ref.shape)
    assert jnp.array_equal(out, ref), "tiled path mismatch vs reference"

    # Lane-unaligned shape exercises the fallback path.
    a_odd = jax.random.normal(kc, (2, 3, 5, 7), dtype=jnp.float32)
    b_odd = jax.random.normal(kd, (2, 3, 5, 7), dtype=jnp.float32)
    out_odd = cat_slice_cat(a_odd, b_odd)
    jax.block_until_ready(out_odd)
    ref_odd = jnp.concatenate([a_odd, b_odd, a_odd], axis=1)
    assert jnp.array_equal(out_odd, ref_odd), "fallback path mismatch"

    print("KERNEL_OK")
</pallas_src>

<mosaic_0001>
module attributes {stable_mosaic.version = 11 : i64} {
  func.func @_cat_abc_tiled_kernel(%arg0: i32, %arg1: i32, %arg2: memref<1x8x512xf32, #tpu.memory_space<vmem>>, %arg3: memref<1x8x512xf32, #tpu.memory_space<vmem>>, %arg4: memref<1x3x8x512xf32, #tpu.memory_space<vmem>>) attributes {dimension_semantics = [#tpu.dimension_semantics<parallel>, #tpu.dimension_semantics<parallel>], iteration_bounds = array<i64: 2, 1>, scalar_prefetch = 0 : i64, scratch_operands = 0 : i64, tpu.core_type = #tpu.core_type<tc>, window_params = [{transform_indices = @transform_0, window_bounds = array<i64: 1, 8, 512>}, {transform_indices = @transform_1, window_bounds = array<i64: 1, 8, 512>}, {transform_indices = @transform_2, window_bounds = array<i64: 1, 3, 8, 512>}]} {
    %c0 = arith.constant 0 : index
    %c0_0 = arith.constant 0 : index
    %c0_1 = arith.constant 0 : index
    %0 = vector.load %arg2[%c0, %c0_0, %c0_1] : memref<1x8x512xf32, #tpu.memory_space<vmem>>, vector<1x8x512xf32>
    %c0_2 = arith.constant 0 : index
    %c0_3 = arith.constant 0 : index
    %c0_4 = arith.constant 0 : index
    %c0_5 = arith.constant 0 : index
    %1 = vector.load %arg4[%c0_2, %c0_3, %c0_4, %c0_5] : memref<1x3x8x512xf32, #tpu.memory_space<vmem>>, vector<1x1x8x512xf32>
    %2 = vector.shape_cast %1 : vector<1x1x8x512xf32> to vector<1x8x512xf32>
    %3 = vector.shape_cast %0 : vector<1x8x512xf32> to vector<1x1x8x512xf32>
    tpu.vector_store %arg4[%c0_2, %c0_3, %c0_4, %c0_5], %3 {strides = array<i32>} : memref<1x3x8x512xf32, #tpu.memory_space<vmem>>, vector<1x1x8x512xf32>,
    %c0_6 = arith.constant 0 : index
    %c0_7 = arith.constant 0 : index
    %c0_8 = arith.constant 0 : index
    %4 = vector.load %arg3[%c0_6, %c0_7, %c0_8] : memref<1x8x512xf32, #tpu.memory_space<vmem>>, vector<1x8x512xf32>
    %c0_9 = arith.constant 0 : index
    %c1 = arith.constant 1 : index
    %c0_10 = arith.constant 0 : index
    %c0_11 = arith.constant 0 : index
    %5 = vector.load %arg4[%c0_9, %c1, %c0_10, %c0_11] : memref<1x3x8x512xf32, #tpu.memory_space<vmem>>, vector<1x1x8x512xf32>
    %6 = vector.shape_cast %5 : vector<1x1x8x512xf32> to vector<1x8x512xf32>
    %7 = vector.shape_cast %4 : vector<1x8x512xf32> to vector<1x1x8x512xf32>
    tpu.vector_store %arg4[%c0_9, %c1, %c0_10, %c0_11], %7 {strides = array<i32>} : memref<1x3x8x512xf32, #tpu.memory_space<vmem>>, vector<1x1x8x512xf32>,
    %c0_12 = arith.constant 0 : index
    %c2 = arith.constant 2 : index
    %c0_13 = arith.constant 0 : index
    %c0_14 = arith.constant 0 : index
    %8 = vector.load %arg4[%c0_12, %c2, %c0_13, %c0_14] : memref<1x3x8x512xf32, #tpu.memory_space<vmem>>, vector<1x1x8x512xf32>
    %9 = vector.shape_cast %8 : vector<1x1x8x512xf32> to vector<1x8x512xf32>
    %10 = vector.shape_cast %0 : vector<1x8x512xf32> to vector<1x1x8x512xf32>
    tpu.vector_store %arg4[%c0_12, %c2, %c0_13, %c0_14], %10 {strides = array<i32>} : memref<1x3x8x512xf32, #tpu.memory_space<vmem>>, vector<1x1x8x512xf32>,
    return
  }
  func.func @transform_0(%arg0: i32, %arg1: i32) -> (i32, i32, i32) {
    %c0_i32 = arith.constant 0 : i32
    %c0_i32_0 = arith.constant 0 : i32
    return %arg0, %arg1, %c0_i32 : i32, i32, i32
  }
  func.func @transform_1(%arg0: i32, %arg1: i32) -> (i32, i32, i32) {
    %c0_i32 = arith.constant 0 : i32
    %c0_i32_0 = arith.constant 0 : i32
    return %arg0, %arg1, %c0_i32 : i32, i32, i32
  }
  func.func @transform_2(%arg0: i32, %arg1: i32) -> (i32, i32, i32, i32) {
    %c0_i32 = arith.constant 0 : i32
    %c0_i32_0 = arith.constant 0 : i32
    %c0_i32_1 = arith.constant 0 : i32
    return %arg0, %c0_i32, %arg1, %c0_i32_0 : i32, i32, i32, i32
  }
}

</mosaic_0001>

<bundles_post_ra>
// kernel: tpu_custom_call.1
= control target key start
LH: loop header
LB: loop body
LE: loop exit
PB: predicated region body
PF: predicated region fallthrough
CT: control target
= control target key end

     0   :  { %7 = vsyncpa [#allocation3], 0  ;;  %s859_s0 = inlined_call_operand.hbm [shape: f32[2,8,512], index: 0, kind: input, shape index: {}]   ;;  %s860_s1 = inlined_call_operand.hbm [shape: f32[2,8,512], index: 1, kind: input, shape index: {}]   ;;  %s861_s2 = inlined_call_operand.hbm [shape: f32[2,3,8,512], index: 2, kind: output, shape index: {}]  }
   0x1   :  { %9 = vsyncpa [#allocation3 + $0x1], 0 }
   0x2   :  { %10 = vsyncpa [#allocation6], 0 }
   0x3   :  { %12 = vsyncpa [#allocation6 + $0x1], 0 }
   0x4   :  { %13 = vsyncpa [#allocation4], 0 }
   0x5   :  { %15 = vsyncpa [#allocation4 + $0x1], 0  ;;  %s636_s9 = smov 0   ;;  %s638_s10 = smov 0  }
   0x6   :  { %s640_s11 = smov 0   ;;  %s642_s12 = smov 0  }
   0x7   :  { %s644_s13 = smov 0   ;;  %s646_s14 = smov 0  }
   0x8 LB: > { %s371_s15 = sadd.s32 4294967295, %s614_s14   ;;  %s372_s16 = sadd.s32 4294967294, %s614_s14   ;;  %s614_s14 = sphi %s646_s14, %s21_s14   ;;  %s610_s13 = sphi %s644_s13, %s881_s13   ;;  %s606_s12 = sphi %s642_s12, %s880_s12   ;;  %s602_s11 = sphi %s640_s11, %s879_s11   ;;  %s598_s10 = sphi %s638_s10, %s878_s10   ;;  %s594_s9 = sphi %s636_s9, %s877_s9  }
   0x9   : > { %s33_s17 = sadd.s32 1, %s610_s13  ;;  %s42_s18 = sadd.s32 1, %s602_s11 }
   0xa   : > { %p35_p0 = scmp.ge.s32.totalorder %s33_s17, 2  ;;  %p49_p1 = scmp.ne.s32.totalorder %s602_s11, %s598_s10 }
   0xb   : > { %p50_p2 = scmp.eq.s32.totalorder %s614_s14, 0  ;;  %p55_p3 = scmp.ne.s32.totalorder %s598_s10, %s594_s9 }
   0xc   : > { %s883_s17 = smov (%p35_p0, %s33_s17), 0  ;;  %p56_p5 = scmp.eq.s32.totalorder %s371_s15, 0 }
   0xd   : > { %p677_p4 = por %p50_p2, %p49_p1  ;;  %s37_s20 = ssub.s32 %s610_s13, %s883_s17 }
   0xe   : > { %p109_p6 = scmp.eq.s32.totalorder %s371_s15, 1  ;;  %p40_p7 = scmp.eq.s32.totalorder %s37_s20, 0 }
   0xf   : > { %p683_p8 = por %p56_p5, %p55_p3  ;;  %p115_p10 = scmp.eq.s32.totalorder %s372_s16, 1 }
  0x10   : > { %p687_p9 = por %p109_p6, %p49_p1  ;;  %p416_p13 = scmp.lt.s32.totalorder %s614_s14, 2 }
  0x11   : > { %s865_s21 = scalar_select %p683_p8, 1, 0 }
  0x12   : > { %s866_s22 = scalar_select %p687_p9, 1, 0 }
  0x13   : > { %s692_s23 = scalar_select %p40_p7, %s602_s11, %s42_s18  }
  0x14   : > { %p694_p11 = por %p115_p10, %p55_p3  ;;  %s701_s25 = sand.u32 1, %s602_s11  }
  0x15   : > { %s375_s26 = sshll.u32 %s701_s25, 5  ;;  %s395_s27 = sshll.u32 %s610_s13, 9 }
  0x16   : > { %s867_s24 = scalar_select %p694_p11, 1, 0 }
  0x17   : > { %s710_s30 = scalar_lea.hbm %s859_s0, %s395_s27  ;;  %s139_s3 = scalar_lea.vmem [#allocation2], %s375_s26 }
  0x18   : > { %s149_s4 = sshll.u32 %s139_s3, 4  ;;  %p718_p0 = pnand %p416_p13, %p677_p4  ;;  %s714_s4 = int_to_ptr.vmem [resolvable:$true] %s149_s4 }
  0x19   : > { %s136_s6 = scalar_lea.sflag [#allocation3], %s701_s25  ;;  %s468_s7 = scalar_lea.hbm %s710_s30, 512 }
  0x1a   : > { %p469_p3 = scmp.ne.s32.totalorder %s710_s30, %s468_s7  ;;  %p470_p5 = pneg %p718_p0 }
  0x1b   : > { %s473_s16 = scalar_lea.hbm %s859_s0, 1024  ;;  %p474_p4 = scmp.lt.u32.totalorder %s710_s30, %s859_s0 }
  0x1c   : > { %p471_p6 = pnand %p470_p5, %p469_p3  ;;  %p475_p10 = scmp.lt.u32.totalorder %s473_s16, %s468_s7 }
  0x1d   : > { %p477_p12 = scmp.lt.u32.totalorder %s468_s7, %s710_s30 }
  0x1e   : > { %p472_p7 = pneg %p471_p6  ;;  %p476_p13 = por %p475_p10, %p474_p4 }
  0x20   : > { %p478_p1 = por %p477_p12, %p476_p13 }
  0x22   : > { %p479_p2 = pnand %p478_p1, %p472_p7 }
  0x24   : > { %482 = shalt.err (!%p479_p2)
}
  0x25   : > { %s483_s20 = scalar_lea.vmem %s714_s4, 512  ;;  %s616_s28 = smov [#allocation2]  }
  0x26   : > { %p484_p3 = scmp.ne.s32.totalorder %s714_s4, %s483_s20  ;;  %s488_s29 = sshll.u32 %s616_s28, 4  ;;  %s489_s29 = int_to_ptr.vmem [resolvable:$false] %s488_s29 }
  0x27   : > { %s490_s3 = scalar_lea.vmem %s489_s29, 1024  ;;  %p491_p9 = scmp.lt.s32.totalorder %s714_s4, %s489_s29 }
  0x28   : > { %p486_p6 = pnand %p484_p3, %p470_p5  ;;  %p492_p4 = scmp.lt.s32.totalorder %s490_s3, %s483_s20 }
  0x2a   : > { %p487_p11 = pneg %p486_p6  ;;  %p493_p10 = por %p492_p4, %p491_p9 }
  0x2c   : > { %p494_p12 = pnand %p493_p10, %p487_p11 }
  0x2e   : > { %497 = shalt.err (!%p494_p12)
}
  0x2f   : > { %408 = dma.hbm_to_vmem [thread:$0]  (!%p718_p0), %s710_s30, 512, %s714_s4, %s136_s6  }
  0x30   : > { %p869_p1 = scmp.lt.s32.totalorder %s614_s14, 3  ;;  %p870_p2 = scmp.ge.s32.totalorder %s614_s14, 1 }
  0x31   : > { %s763_s16 = scalar_lea.hbm %s860_s1, %s395_s27  ;;  %s160_s18 = scalar_lea.vmem [#allocation5], %s375_s26 }
  0x32   : > { %p754_p7 = pnand %p870_p2, %p869_p1  ;;  %s170_s19 = sshll.u32 %s160_s18, 4  ;;  %s171_s19 = int_to_ptr.vmem [resolvable:$true] %s170_s19 }
  0x33   : > { %s157_s30 = scalar_lea.sflag [#allocation6], %s701_s25  ;;  %s498_s4 = scalar_lea.hbm %s763_s16, 512 }
  0x34   : > { %s871_s7 = scalar_select %p754_p7, 1, 0 }
  0x35   : > { %p499_p9 = scmp.ne.s32.totalorder %s763_s16, %s498_s4  ;;  %s503_s27 = scalar_lea.hbm %s860_s1, 1024 }
  0x36   : > { %p504_p3 = scmp.lt.u32.totalorder %s763_s16, %s860_s1  ;;  %p505_p6 = scmp.lt.u32.totalorder %s503_s27, %s498_s4 }
  0x37   : > { %p501_p11 = pnand %p499_p9, %p470_p5  ;;  %p507_p10 = scmp.lt.u32.totalorder %s498_s4, %s763_s16 }
  0x38   : > { %p506_p4 = por %p505_p6, %p504_p3 }
  0x39   : > { %p502_p13 = pneg %p501_p11 }
  0x3a   : > { %p508_p12 = por %p507_p10, %p506_p4 }
  0x3c   : > { %p509_p1 = pnand %p508_p12, %p502_p13 }
  0x3e   : > { %512 = shalt.err (!%p509_p1)
}
  0x3f   : > { %s513_s25 = scalar_lea.vmem %s171_s19, 512  ;;  %s617_s26 = smov [#allocation5]  }
  0x40   : > { %p514_p2 = scmp.ne.s32.totalorder %s171_s19, %s513_s25  ;;  %s518_s3 = sshll.u32 %s617_s26, 4  ;;  %s519_s3 = int_to_ptr.vmem [resolvable:$false] %s518_s3 }
  0x41   : > { %s520_s8 = scalar_lea.vmem %s519_s3, 1024  ;;  %p521_p8 = scmp.lt.s32.totalorder %s171_s19, %s519_s3 }
  0x42   : > { %p516_p9 = pnand %p514_p2, %p470_p5  ;;  %p522_p7 = scmp.lt.s32.totalorder %s520_s8, %s513_s25 }
  0x44   : > { %p517_p11 = pneg %p516_p9  ;;  %p523_p3 = por %p522_p7, %p521_p8 }
  0x46   : > { %p524_p6 = pnand %p523_p3, %p517_p11 }
  0x48   : > { %527 = shalt.err (!%p524_p6)
}
  0x49   : > { %411 = dma.hbm_to_vmem [thread:$0]  (!%p718_p0), %s763_s16, 512, %s171_s19, %s157_s30  }
  0x4a   : > { %p872_p13 = scmp.ne.s32.totalorder %s871_s7, 0 }
  0x4b   : > { %s790_s15 = sand.u32 (!%p872_p13), 1, %s598_s10   ;;  %p873_p5 = scmp.ne.s32.totalorder (!%p872_p13), %s865_s21, 0 }
  0x4c   : > { %179 = sbr.rel (%p872_p13) target bundleno = 113 (0x71), region = 28  ;;  %s382_s18 = sshll.u32 (!%p872_p13), %s790_s15, 5 }
  0x4d   : > { %s182_s4 = scalar_lea.sflag (!%p872_p13), [#allocation3], %s790_s15  ;;  %s185_s6 = scalar_lea.vmem (!%p872_p13), [#allocation2], %s382_s18 }
  0x53   : > { %581 = dma.done.wait (%p873_p5), %s182_s4, 512  }
  0x54   : > { %583 = vsyncadd (%p873_p5), %s182_s4, 4294966784  ;;  %s191_s5 = scalar_lea.sflag [#allocation6], %s790_s15  ;;  %s194_s16 = scalar_lea.vmem [#allocation5], %s382_s18 }
  0x55   : > { %585 = dma.done.wait (%p873_p5), %s191_s5, 512  }
  0x56   : > { %587 = vsyncadd (%p873_p5), %s191_s5, 4294966784  ;;  %s397_s7 = smul.u32 96, %s790_s15  ;;  %v220_v0 = vld [vmem:[%s185_s6] sm:$0xff]  ;;  %v221_v1 = vld [vmem:[%s185_s6 + $0x8] sm:$0xff]  ;;  %s243_s28 = scalar_lea.sflag [#allocation4], %s790_s15 }
  0x57   : > { %s398_s19 = smul.u32 1536, %s606_s12  ;;  %v222_v2 = vld [vmem:[%s185_s6 + $0x10] sm:$0xff]  ;;  %v223_v3 = vld [vmem:[%s185_s6 + $0x18] sm:$0xff]  ;;  %v228_v4 = vld [vmem:[%s194_s16] sm:$0xff]  ;;  %p874_p0 = scmp.ne.s32.totalorder %s866_s22, 0 }
  0x58   : > { %s219_s30 = scalar_lea.vmem [#allocation7], %s397_s7  ;;  %v229_v5 = vld [vmem:[%s194_s16 + $0x8] sm:$0xff]  ;;  %v230_v6 = vld [vmem:[%s194_s16 + $0x10] sm:$0xff]  ;;  %v231_v7 = vld [vmem:[%s194_s16 + $0x18] sm:$0xff]  ;;  %s618_s25 = smov [#allocation7]  }
  0x59   : > { %s258_s20 = sshll.u32 %s219_s30, 4  ;;  %224 = vst [vmem:[%s219_s30] sm:$0xff] %v220_v0  ;;  %388 = vst [vmem:[%s219_s30 + $0x40] sm:$0xff] %v220_v0  ;;  %s808_s12 = scalar_lea.hbm %s861_s2, %s398_s19  ;;  %s810_s20 = int_to_ptr.vmem [resolvable:$true] %s258_s20 }
  0x5a   : > { %225 = vst [vmem:[%s219_s30 + $0x8] sm:$0xff] %v221_v1  ;;  %389 = vst [vmem:[%s219_s30 + $0x48] sm:$0xff] %v221_v1  ;;  %s528_s29 = scalar_lea.vmem %s810_s20, 1536  ;;  %s532_s26 = sshll.u32 %s618_s25, 4  ;;  %s533_s26 = int_to_ptr.vmem [resolvable:$false] %s532_s26 }
  0x5b   : > { %226 = vst [vmem:[%s219_s30 + $0x10] sm:$0xff] %v222_v2  ;;  %390 = vst [vmem:[%s219_s30 + $0x50] sm:$0xff] %v222_v2  ;;  %p529_p8 = scmp.ne.s32.totalorder %s810_s20, %s528_s29  ;;  %s534_s3 = scalar_lea.vmem %s533_s26, 3072 }
  0x5c   : > { %227 = vst [vmem:[%s219_s30 + $0x18] sm:$0xff] %v223_v3  ;;  %391 = vst [vmem:[%s219_s30 + $0x58] sm:$0xff] %v223_v3  ;;  %p535_p10 = scmp.lt.s32.totalorder %s810_s20, %s533_s26  ;;  %p536_p12 = scmp.lt.s32.totalorder %s534_s3, %s528_s29 }
  0x5d   : > { %384 = vst [vmem:[%s219_s30 + $0x20] sm:$0xff] %v228_v4  ;;  %385 = vst [vmem:[%s219_s30 + $0x28] sm:$0xff] %v229_v5  ;;  %p530_p7 = pnand %p529_p8, %p874_p0 }
  0x5e   : > { %386 = vst [vmem:[%s219_s30 + $0x30] sm:$0xff] %v230_v6  ;;  %387 = vst [vmem:[%s219_s30 + $0x38] sm:$0xff] %v231_v7  ;;  %p537_p1 = por %p536_p12, %p535_p10 }
  0x5f   : > { %p531_p4 = pneg %p530_p7 }
  0x61   : > { %p538_p2 = pnand %p537_p1, %p531_p4 }
  0x63   : > { %541 = shalt.err (!%p538_p2)
}
  0x64   : > { %s542_s8 = scalar_lea.hbm %s808_s12, 1536  ;;  %s546_s6 = scalar_lea.hbm %s861_s2, 3072 }
  0x65   : > { %p543_p9 = scmp.ne.s32.totalorder %s808_s12, %s542_s8  ;;  %p547_p6 = scmp.lt.u32.totalorder %s808_s12, %s861_s2 }
  0x66   : > { %p548_p13 = scmp.lt.u32.totalorder %s546_s6, %s542_s8  ;;  %p550_p8 = scmp.lt.u32.totalorder %s542_s8, %s808_s12 }
  0x67   : > { %p544_p11 = pnand %p543_p9, %p874_p0 }
  0x68   : > { %p549_p5 = por %p548_p13, %p547_p6 }
  0x69   : > { %p545_p3 = pneg %p544_p11 }
  0x6a   : > { %p551_p7 = por %p550_p8, %p549_p5 }
  0x6c   : > { %p552_p4 = pnand %p551_p7, %p545_p3 }
  0x6e   : > { %555 = shalt.err (!%p552_p4)
}
  0x6f   : > { %s619_s7 = smov 512   ;;  %s620_s19 = smov 32  }
  0x70   : > { %403 = dma.vmem_to_hbm [thread:$0]  (%p874_p0), %s810_s20, 1536, %s808_s12, %s243_s28, %s619_s7, %s619_s7, %s620_s19  }
  0x71 PF: > { %s273_s30 = sand.u32 1, %s594_s9   ;;  %p875_p10 = scmp.ne.s32.totalorder %s867_s24, 0 }
  0x72   : > { %p876_p12 = scmp.ge.s32.totalorder %s614_s14, 2  ;;  %s274_s21 = scalar_lea.sflag [#allocation4], %s273_s30 }
  0x74   : > { %p413_p1 = pnand %p876_p12, %p875_p10 }
  0x76   : > { %589 = dma.done.wait (!%p413_p1), %s274_s21, 1536  }
  0x77   : > { %591 = vsyncadd (!%p413_p1), %s274_s21, 4294965760  ;;  %s21_s14 = sadd.s32 1, %s614_s14   ;;  %s877_s9 = smov %s598_s10 }
  0x78   : > { %p18_p2 = scmp.ge.s32.totalorder %s21_s14, 4   ;;  %s878_s10 = smov %s602_s11 }
  0x79   : > { %s879_s11 = smov %s692_s23  ;;  %s880_s12 = smov %s610_s13 }
  0x7a   : > { %s881_s13 = smov %s883_s17  ;;  %20 = sbr.rel (!%p18_p2) target bundleno = 8 (0x8), region = 88 }
  0x81   :  { %279 = vsyncpa [#allocation3], 1 }
  0x82   :  { %281 = vsyncpa [#allocation3 + $0x1], 1 }
  0x83   :  { %282 = vsyncpa [#allocation6], 1 }
  0x84   :  { %284 = vsyncpa [#allocation6 + $0x1], 1 }
  0x85   :  { %285 = vsyncpa [#allocation4], 1 }
  0x86   :  { %287 = vsyncpa [#allocation4 + $0x1], 1 }

</bundles_post_ra>
